<compile_context>
chip_gen: v7x
topology: tpu7x:2x2x1
jax: 0.10.0
libtpu: 0.0.40
codegen_flags: <defaults>
</compile_context>

<pallas_src>
import functools

import jax
import jax.numpy as jnp
from jax.experimental import pallas as pl
from jax.experimental.pallas import tpu as pltpu

C_OUT = 128
CONV_KS = [5, 5, 3, 3]
K_MAX = max(CONV_KS)   # 5
K_MIN = min(CONV_KS)   # 3
NEG_INF = -3.0e38      # Python float (NOT a jax array) -> inlined as a literal


def _round_up(x, m):
    return ((x + m - 1) // m) * m


# ---------------------------------------------------------------------------
# Fused kernel: all conv branches + ReLU + global max-pool for a (TB, S, E) tile.
#   conv(x)[b, c, t] = bias[c] + sum_{k,e} x[b, t+k, e] * W[c, k, e]
# implemented as K shifted (TB,TT,E)@(E,256) bf16 matmuls accumulated in f32,
# with a running max over time chunks held in VMEM scratch.
# ---------------------------------------------------------------------------
def _fused_conv_kernel(x_ref, w5_ref, w3_ref, b_ref, o_ref, mx_ref, *, TT, S):
    # x_ref: (TB, S_pad, E) bf16   w5_ref: (5, E, 256) bf16   w3_ref: (3, E, 256) bf16
    # b_ref: (1, 512) f32          o_ref: (TB, 512) f32       mx_ref: (TB, 512) f32
    ti = pl.program_id(1)
    nt = pl.num_programs(1)
    TB = x_ref.shape[0]
    c2 = w5_ref.shape[2]

    @pl.when(ti == 0)
    def _init():
        mx_ref[...] = jnp.full_like(mx_ref, NEG_INF)

    # Load one time chunk (plus K_MAX-1 halo rows) from the resident x block.
    start = pl.multiple_of(ti * TT, 8)
    xw = x_ref[:, pl.ds(start, TT + K_MAX - 1), :]            # (TB, TT+4, E) bf16

    acc5 = jnp.zeros((TB, TT, c2), jnp.float32)
    for k in range(K_MAX):                                    # merged K=5 branches
        acc5 = acc5 + jax.lax.dot_general(
            xw[:, k:k + TT, :], w5_ref[k],
            dimension_numbers=(((2,), (0,)), ((), ())),
            preferred_element_type=jnp.float32)               # (TB, TT, 256)
    acc3 = jnp.zeros((TB, TT, c2), jnp.float32)
    for k in range(K_MIN):                                    # merged K=3 branches
        acc3 = acc3 + jax.lax.dot_general(
            xw[:, k:k + TT, :], w3_ref[k],
            dimension_numbers=(((2,), (0,)), ((), ())),
            preferred_element_type=jnp.float32)               # (TB, TT, 256)

    # Mask conv positions beyond the valid ("valid"-padding) range before the max.
    pos = ti * TT + jax.lax.broadcasted_iota(jnp.int32, (1, TT, 1), 1)
    acc5 = jnp.where(pos < (S - K_MAX + 1), acc5, NEG_INF)
    acc3 = jnp.where(pos < (S - K_MIN + 1), acc3, NEG_INF)

    cur = jnp.concatenate([jnp.max(acc5, axis=1), jnp.max(acc3, axis=1)], axis=1)
    mx_ref[...] = jnp.maximum(mx_ref[...], cur)               # running max, (TB, 512)

    @pl.when(ti == nt - 1)
    def _finish():
        # bias + ReLU commute with max over time -> apply once per (TB, 512).
        o_ref[...] = jnp.maximum(mx_ref[...] + b_ref[...], 0.0)


def fused_conv_features(x_emb, conv_ws, conv_bs):
    """x_emb: (BB, S, E) -> concatenated branch features (BB, 4*C_OUT) f32."""
    BB, S, E = x_emb.shape
    assert S >= K_MAX, "sequence shorter than largest conv kernel"

    # Merge same-K branches -> fatter N=256 matmuls; cast weights to bf16.
    w5 = jnp.concatenate([conv_ws[0], conv_ws[1]], axis=2).astype(jnp.bfloat16)
    w3 = jnp.concatenate([conv_ws[2], conv_ws[3]], axis=2).astype(jnp.bfloat16)
    b_all = jnp.concatenate(conv_bs, axis=0).reshape(1, 4 * C_OUT).astype(jnp.float32)

    # Tiling: small batch tile (double-buffered x stays far below v7x's VMEM),
    # time chunks of <=128 positions reduced into a running max.
    TB = BB if BB <= 8 else 8
    BB_pad = _round_up(BB, TB)
    T_cover = S - K_MIN + 1                       # conv positions to cover
    TT = min(128, _round_up(T_cover, 8))
    NT = (T_cover + TT - 1) // TT
    S_pad = NT * TT + K_MAX - 1                   # halo for the last time chunk

    x = x_emb.astype(jnp.bfloat16)
    x = jnp.pad(x, ((0, BB_pad - BB), (0, S_pad - S), (0, 0)))

    kernel = functools.partial(_fused_conv_kernel, TT=TT, S=S)
    feats = pl.pallas_call(
        kernel,
        out_shape=jax.ShapeDtypeStruct((BB_pad, 4 * C_OUT), jnp.float32),
        grid_spec=pltpu.PrefetchScalarGridSpec(
            num_scalar_prefetch=0,
            grid=(BB_pad // TB, NT),
            in_specs=[
                pl.BlockSpec((TB, S_pad, E), lambda bi, ti: (bi, 0, 0)),
                pl.BlockSpec((K_MAX, E, 2 * C_OUT), lambda bi, ti: (0, 0, 0)),
                pl.BlockSpec((K_MIN, E, 2 * C_OUT), lambda bi, ti: (0, 0, 0)),
                pl.BlockSpec((1, 4 * C_OUT), lambda bi, ti: (0, 0)),
            ],
            out_specs=pl.BlockSpec((TB, 4 * C_OUT), lambda bi, ti: (bi, 0)),
            scratch_shapes=[pltpu.VMEM((TB, 4 * C_OUT), jnp.float32)],
        ),
        compiler_params=pltpu.CompilerParams(
            dimension_semantics=("parallel", "arbitrary"),
            vmem_limit_bytes=32 * 1024 * 1024),
    )(x, w5, w3, b_all)
    return feats[:BB]


# ---------------------------------------------------------------------------
# Cosine similarity along dim=1, eps=1e-6:  <a,b> / max(||a||*||b||, eps)
# computed as dot * rsqrt(max(|a|^2*|b|^2, eps^2))  (rsqrt -> EUP, no divide).
# ---------------------------------------------------------------------------
def _cosine_kernel(a_ref, b_ref, o_ref, *, eps):
    a = a_ref[...].astype(jnp.float32)
    b = b_ref[...].astype(jnp.float32)
    dot = jnp.sum(a * b, axis=1, keepdims=True)
    na2 = jnp.sum(a * a, axis=1, keepdims=True)
    nb2 = jnp.sum(b * b, axis=1, keepdims=True)
    eps2 = float(eps) * float(eps)                # Python float literal, not a jax const
    o_ref[...] = dot * jax.lax.rsqrt(jnp.maximum(na2 * nb2, eps2))


def cosine_similarity(a, b, eps=1e-6):
    B, D = a.shape
    out = pl.pallas_call(
        functools.partial(_cosine_kernel, eps=eps),
        out_shape=jax.ShapeDtypeStruct((B, 1), jnp.float32),
        in_specs=[
            pl.BlockSpec((B, D), lambda: (0, 0)),
            pl.BlockSpec((B, D), lambda: (0, 0)),
        ],
        out_specs=pl.BlockSpec((B, 1), lambda: (0, 0)),
    )(a, b)
    return out[:, 0]


# ---------------------------------------------------------------------------
# SiameseCNN forward (glue: embedding gather, slicing, param bookkeeping in JAX)
# ---------------------------------------------------------------------------
def siamese_cnn_forward(tokens_pair, emb_weight, conv_weights, conv_biases):
    # tokens_pair: (2, B, S) int32
    _, B, S = tokens_pair.shape
    # Embedding lookup (glue), gathered in bf16 to halve HBM traffic for x_emb.
    # TODO(synk): gather embedding rows inside the kernel (scalar-prefetch tokens +
    #             manual DMA) to avoid materializing x_emb in HBM at all.
    x_emb = emb_weight.astype(jnp.bfloat16)[tokens_pair.reshape(2 * B, S)]  # (2B,S,E)
    feats = fused_conv_features(x_emb, conv_weights, conv_biases)           # (2B,512)
    # TODO(synk): nn.Dropout is stochastic at train time; eval-mode identity used here.
    return cosine_similarity(feats[:B], feats[B:])


def init_params(key, n_token, embedding_dim):
    keys = jax.random.split(key, 2 * len(CONV_KS) + 1)
    # nn.Embedding: uniform(-0.1, 0.1), padding_idx=0 -> zero row 0
    emb_w = jax.random.uniform(keys[0], (n_token, embedding_dim), jnp.float32,
                               minval=-0.1, maxval=0.1)
    emb_w = emb_w.at[0].set(0.0)
    conv_ws, conv_bs = [], []
    for i, K in enumerate(CONV_KS):
        fan_in = 1 * K * embedding_dim
        bound = 1.0 / (fan_in ** 0.5)
        # PyTorch Conv2d weight layout (C_out, 1, K, E); stored for kernel as (K, E, C_out)
        w = jax.random.uniform(keys[1 + 2 * i], (C_OUT, 1, K, embedding_dim),
                               jnp.float32, minval=-bound, maxval=bound)
        b = jax.random.uniform(keys[2 + 2 * i], (C_OUT,), jnp.float32,
                               minval=-bound, maxval=bound)
        conv_ws.append(jnp.transpose(w[:, 0, :, :], (1, 2, 0)))  # (K, E, C)
        conv_bs.append(b)
    return emb_w, conv_ws, conv_bs


def _reference_forward(tokens_pair, emb_w, conv_ws, conv_bs):
    # Pure-JAX f32 reference for a sanity check.
    feats = []
    for idx in range(2):
        x = emb_w[tokens_pair[idx]]  # (B, S, E)
        branches = []
        for w, b in zip(conv_ws, conv_bs):
            K = w.shape[0]
            T = x.shape[1] - K + 1
            acc = jnp.zeros((x.shape[0], T, C_OUT), jnp.float32)
            for k in range(K):
                acc = acc + jnp.einsum("bte,ec->btc", x[:, k:k + T, :], w[k])
            acc = jnp.maximum(acc + b[None, None, :], 0.0)
            branches.append(jnp.max(acc, axis=1))
        feats.append(jnp.concatenate(branches, axis=1))
    a, b = feats
    num = jnp.sum(a * b, axis=1)
    den = jnp.maximum(jnp.linalg.norm(a, axis=1) * jnp.linalg.norm(b, axis=1), 1e-6)
    return num / den


if __name__ == "__main__":
    B, S, E, N_TOKEN = 2, 16, 32, 64

    key = jax.random.PRNGKey(0)
    k_tok, k_par = jax.random.split(key)
    tokens_pair = jax.random.randint(k_tok, (2, B, S), 0, N_TOKEN, dtype=jnp.int32)

    emb_w, conv_ws, conv_bs = init_params(k_par, N_TOKEN, E)

    out = siamese_cnn_forward(tokens_pair, emb_w, conv_ws, conv_bs)
    out = jax.block_until_ready(out)
    assert out.shape == (B,), out.shape

    ref = _reference_forward(tokens_pair, emb_w, conv_ws, conv_bs)
    # bf16 matmul path -> relaxed tolerance vs. the f32 reference.
    assert jnp.allclose(out, ref, rtol=3e-2, atol=3e-2), (out, ref)

    print("KERNEL_OK")
</pallas_src>

<mosaic_0001>
module attributes {stable_mosaic.version = 11 : i64} {
  func.func @_fused_conv_kernel(%arg0: i32, %arg1: i32, %arg2: memref<4x20x32xbf16, #tpu.memory_space<vmem>>, %arg3: memref<5x32x256xbf16, #tpu.memory_space<vmem>>, %arg4: memref<3x32x256xbf16, #tpu.memory_space<vmem>>, %arg5: memref<1x512xf32, #tpu.memory_space<vmem>>, %arg6: memref<4x512xf32, #tpu.memory_space<vmem>>, %arg7: memref<4x512xf32, #tpu.memory_space<vmem>>) attributes {dimension_semantics = [#tpu.dimension_semantics<parallel>, #tpu.dimension_semantics<arbitrary>], iteration_bounds = array<i64: 1, 1>, scalar_prefetch = 0 : i64, scratch_operands = 1 : i64, tpu.core_type = #tpu.core_type<tc>, window_params = [{transform_indices = @transform_0, window_bounds = array<i64: 4, 20, 32>}, {pipeline_mode = #tpu.pipeline_mode<synchronous>, transform_indices = @transform_1, window_bounds = array<i64: 5, 32, 256>}, {pipeline_mode = #tpu.pipeline_mode<synchronous>, transform_indices = @transform_2, window_bounds = array<i64: 3, 32, 256>}, {pipeline_mode = #tpu.pipeline_mode<synchronous>, transform_indices = @transform_3, window_bounds = array<i64: 1, 512>}, {transform_indices = @transform_4, window_bounds = array<i64: 4, 512>}]} {
    %c0_i32 = arith.constant 0 : i32
    %0 = arith.cmpi eq, %arg1, %c0_i32 : i32
    %1 = arith.extui %0 : i1 to i32
    %c0_i32_0 = arith.constant 0 : i32
    %2 = arith.cmpi ne, %1, %c0_i32_0 : i32
    scf.if %2 {
      %cst_42 = arith.constant -3.000000e+38 : f32
      %74 = vector.broadcast %cst_42 : f32 to vector<4x512xf32>
      %c0_43 = arith.constant 0 : index
      %c0_44 = arith.constant 0 : index
      %75 = vector.load %arg7[%c0_43, %c0_44] : memref<4x512xf32, #tpu.memory_space<vmem>>, vector<4x512xf32>
      tpu.vector_store %arg7[%c0_43, %c0_44], %74 {strides = array<i32>} : memref<4x512xf32, #tpu.memory_space<vmem>>, vector<4x512xf32>,
    } else {
    }
    %c16_i32 = arith.constant 16 : i32
    %3 = arith.muli %arg1, %c16_i32 : i32
    %4 = tpu.assume_multiple %3, 8 : i32
    %c0 = arith.constant 0 : index
    %5 = arith.index_cast %4 : i32 to index
    %c0_1 = arith.constant 0 : index
    %6 = vector.load %arg2[%c0, %5, %c0_1] : memref<4x20x32xbf16, #tpu.memory_space<vmem>>, vector<4x20x32xbf16>
    %cst = arith.constant 0.000000e+00 : f32
    %7 = vector.broadcast %cst : f32 to vector<4x16x256xf32>
    %8 = vector.extract_strided_slice %6 {offsets = [0, 0, 0], sizes = [4, 16, 32], strides = [1, 1, 1]} : vector<4x20x32xbf16> to vector<4x16x32xbf16>
    %c0_2 = arith.constant 0 : index
    %c0_3 = arith.constant 0 : index
    %c0_4 = arith.constant 0 : index
    %9 = vector.load %arg3[%c0_2, %c0_3, %c0_4] : memref<5x32x256xbf16, #tpu.memory_space<vmem>>, vector<1x32x256xbf16>
    %10 = vector.shape_cast %9 : vector<1x32x256xbf16> to vector<32x256xbf16>
    %cst_5 = arith.constant dense<0.000000e+00> : vector<4x16x256xf32>
    %11 = tpu.matmul %8, %10, %cst_5 {dimension_numbers = #tpu.dot_dimension_numbers<[2], [0], [0, 1], [1], [0, 0, 0, 1, 1, 1], [], []>} : vector<4x16x32xbf16>, vector<32x256xbf16>, vector<4x16x256xf32> -> vector<4x16x256xf32>
    %12 = arith.addf %7, %11 : vector<4x16x256xf32>
    %13 = vector.extract_strided_slice %6 {offsets = [0, 1, 0], sizes = [4, 16, 32], strides = [1, 1, 1]} : vector<4x20x32xbf16> to vector<4x16x32xbf16>
    %c1 = arith.constant 1 : index
    %c0_6 = arith.constant 0 : index
    %c0_7 = arith.constant 0 : index
    %14 = vector.load %arg3[%c1, %c0_6, %c0_7] : memref<5x32x256xbf16, #tpu.memory_space<vmem>>, vector<1x32x256xbf16>
    %15 = vector.shape_cast %14 : vector<1x32x256xbf16> to vector<32x256xbf16>
    %cst_8 = arith.constant dense<0.000000e+00> : vector<4x16x256xf32>
    %16 = tpu.matmul %13, %15, %cst_8 {dimension_numbers = #tpu.dot_dimension_numbers<[2], [0], [0, 1], [1], [0, 0, 0, 1, 1, 1], [], []>} : vector<4x16x32xbf16>, vector<32x256xbf16>, vector<4x16x256xf32> -> vector<4x16x256xf32>
    %17 = arith.addf %12, %16 : vector<4x16x256xf32>
    %18 = vector.extract_strided_slice %6 {offsets = [0, 2, 0], sizes = [4, 16, 32], strides = [1, 1, 1]} : vector<4x20x32xbf16> to vector<4x16x32xbf16>
    %c2 = arith.constant 2 : index
    %c0_9 = arith.constant 0 : index
    %c0_10 = arith.constant 0 : index
    %19 = vector.load %arg3[%c2, %c0_9, %c0_10] : memref<5x32x256xbf16, #tpu.memory_space<vmem>>, vector<1x32x256xbf16>
    %20 = vector.shape_cast %19 : vector<1x32x256xbf16> to vector<32x256xbf16>
    %cst_11 = arith.constant dense<0.000000e+00> : vector<4x16x256xf32>
    %21 = tpu.matmul %18, %20, %cst_11 {dimension_numbers = #tpu.dot_dimension_numbers<[2], [0], [0, 1], [1], [0, 0, 0, 1, 1, 1], [], []>} : vector<4x16x32xbf16>, vector<32x256xbf16>, vector<4x16x256xf32> -> vector<4x16x256xf32>
    %22 = arith.addf %17, %21 : vector<4x16x256xf32>
    %23 = vector.extract_strided_slice %6 {offsets = [0, 3, 0], sizes = [4, 16, 32], strides = [1, 1, 1]} : vector<4x20x32xbf16> to vector<4x16x32xbf16>
    %c3 = arith.constant 3 : index
    %c0_12 = arith.constant 0 : index
    %c0_13 = arith.constant 0 : index
    %24 = vector.load %arg3[%c3, %c0_12, %c0_13] : memref<5x32x256xbf16, #tpu.memory_space<vmem>>, vector<1x32x256xbf16>
    %25 = vector.shape_cast %24 : vector<1x32x256xbf16> to vector<32x256xbf16>
    %cst_14 = arith.constant dense<0.000000e+00> : vector<4x16x256xf32>
    %26 = tpu.matmul %23, %25, %cst_14 {dimension_numbers = #tpu.dot_dimension_numbers<[2], [0], [0, 1], [1], [0, 0, 0, 1, 1, 1], [], []>} : vector<4x16x32xbf16>, vector<32x256xbf16>, vector<4x16x256xf32> -> vector<4x16x256xf32>
    %27 = arith.addf %22, %26 : vector<4x16x256xf32>
    %28 = vector.extract_strided_slice %6 {offsets = [0, 4, 0], sizes = [4, 16, 32], strides = [1, 1, 1]} : vector<4x20x32xbf16> to vector<4x16x32xbf16>
    %c4 = arith.constant 4 : index
    %c0_15 = arith.constant 0 : index
    %c0_16 = arith.constant 0 : index
    %29 = vector.load %arg3[%c4, %c0_15, %c0_16] : memref<5x32x256xbf16, #tpu.memory_space<vmem>>, vector<1x32x256xbf16>
    %30 = vector.shape_cast %29 : vector<1x32x256xbf16> to vector<32x256xbf16>
    %cst_17 = arith.constant dense<0.000000e+00> : vector<4x16x256xf32>
    %31 = tpu.matmul %28, %30, %cst_17 {dimension_numbers = #tpu.dot_dimension_numbers<[2], [0], [0, 1], [1], [0, 0, 0, 1, 1, 1], [], []>} : vector<4x16x32xbf16>, vector<32x256xbf16>, vector<4x16x256xf32> -> vector<4x16x256xf32>
    %32 = arith.addf %27, %31 : vector<4x16x256xf32>
    %cst_18 = arith.constant 0.000000e+00 : f32
    %33 = vector.broadcast %cst_18 : f32 to vector<4x16x256xf32>
    %34 = vector.extract_strided_slice %6 {offsets = [0, 0, 0], sizes = [4, 16, 32], strides = [1, 1, 1]} : vector<4x20x32xbf16> to vector<4x16x32xbf16>
    %c0_19 = arith.constant 0 : index
    %c0_20 = arith.constant 0 : index
    %c0_21 = arith.constant 0 : index
    %35 = vector.load %arg4[%c0_19, %c0_20, %c0_21] : memref<3x32x256xbf16, #tpu.memory_space<vmem>>, vector<1x32x256xbf16>
    %36 = vector.shape_cast %35 : vector<1x32x256xbf16> to vector<32x256xbf16>
    %cst_22 = arith.constant dense<0.000000e+00> : vector<4x16x256xf32>
    %37 = tpu.matmul %34, %36, %cst_22 {dimension_numbers = #tpu.dot_dimension_numbers<[2], [0], [0, 1], [1], [0, 0, 0, 1, 1, 1], [], []>} : vector<4x16x32xbf16>, vector<32x256xbf16>, vector<4x16x256xf32> -> vector<4x16x256xf32>
    %38 = arith.addf %33, %37 : vector<4x16x256xf32>
    %39 = vector.extract_strided_slice %6 {offsets = [0, 1, 0], sizes = [4, 16, 32], strides = [1, 1, 1]} : vector<4x20x32xbf16> to vector<4x16x32xbf16>
    %c1_23 = arith.constant 1 : index
    %c0_24 = arith.constant 0 : index
    %c0_25 = arith.constant 0 : index
    %40 = vector.load %arg4[%c1_23, %c0_24, %c0_25] : memref<3x32x256xbf16, #tpu.memory_space<vmem>>, vector<1x32x256xbf16>
    %41 = vector.shape_cast %40 : vector<1x32x256xbf16> to vector<32x256xbf16>
    %cst_26 = arith.constant dense<0.000000e+00> : vector<4x16x256xf32>
    %42 = tpu.matmul %39, %41, %cst_26 {dimension_numbers = #tpu.dot_dimension_numbers<[2], [0], [0, 1], [1], [0, 0, 0, 1, 1, 1], [], []>} : vector<4x16x32xbf16>, vector<32x256xbf16>, vector<4x16x256xf32> -> vector<4x16x256xf32>
    %43 = arith.addf %38, %42 : vector<4x16x256xf32>
    %44 = vector.extract_strided_slice %6 {offsets = [0, 2, 0], sizes = [4, 16, 32], strides = [1, 1, 1]} : vector<4x20x32xbf16> to vector<4x16x32xbf16>
    %c2_27 = arith.constant 2 : index
    %c0_28 = arith.constant 0 : index
    %c0_29 = arith.constant 0 : index
    %45 = vector.load %arg4[%c2_27, %c0_28, %c0_29] : memref<3x32x256xbf16, #tpu.memory_space<vmem>>, vector<1x32x256xbf16>
    %46 = vector.shape_cast %45 : vector<1x32x256xbf16> to vector<32x256xbf16>
    %cst_30 = arith.constant dense<0.000000e+00> : vector<4x16x256xf32>
    %47 = tpu.matmul %44, %46, %cst_30 {dimension_numbers = #tpu.dot_dimension_numbers<[2], [0], [0, 1], [1], [0, 0, 0, 1, 1, 1], [], []>} : vector<4x16x32xbf16>, vector<32x256xbf16>, vector<4x16x256xf32> -> vector<4x16x256xf32>
    %48 = arith.addf %43, %47 : vector<4x16x256xf32>
    %c16_i32_31 = arith.constant 16 : i32
    %49 = arith.muli %arg1, %c16_i32_31 : i32
    %50 = tpu.iota {dimensions = array<i32: 1>} : vector<1x16x1xi32>
    %51 = vector.broadcast %49 : i32 to vector<1x16x1xi32>
    %52 = arith.addi %51, %50 : vector<1x16x1xi32>
    %c12_i32 = arith.constant 12 : i32
    %53 = vector.broadcast %c12_i32 : i32 to vector<1x16x1xi32>
    %54 = arith.cmpi slt, %52, %53 : vector<1x16x1xi32>
    %cst_32 = arith.constant -3.000000e+38 : f32
    %55 = vector.shape_cast %54 : vector<1x16x1xi1> to vector<1x16x1xi1>
    %56 = vector.broadcast %55 : vector<1x16x1xi1> to vector<4x16x256xi1>
    %57 = vector.broadcast %cst_32 : f32 to vector<4x16x256xf32>
    %58 = arith.select %56, %32, %57 : vector<4x16x256xi1>, vector<4x16x256xf32>
    %c14_i32 = arith.constant 14 : i32
    %59 = vector.broadcast %c14_i32 : i32 to vector<1x16x1xi32>
    %60 = arith.cmpi slt, %52, %59 : vector<1x16x1xi32>
    %cst_33 = arith.constant -3.000000e+38 : f32
    %61 = vector.shape_cast %60 : vector<1x16x1xi1> to vector<1x16x1xi1>
    %62 = vector.broadcast %61 : vector<1x16x1xi1> to vector<4x16x256xi1>
    %63 = vector.broadcast %cst_33 : f32 to vector<4x16x256xf32>
    %64 = arith.select %62, %48, %63 : vector<4x16x256xi1>, vector<4x16x256xf32>
    %cst_34 = arith.constant dense<0xFF800000> : vector<4x256xf32>
    %65 = vector.multi_reduction <maximumf>, %58, %cst_34 [1] : vector<4x16x256xf32> to vector<4x256xf32>
    %cst_35 = arith.constant dense<0xFF800000> : vector<4x256xf32>
    %66 = vector.multi_reduction <maximumf>, %64, %cst_35 [1] : vector<4x16x256xf32> to vector<4x256xf32>
    %67 = tpu.concatenate %65, %66 in 1 : vector<4x256xf32>, vector<4x256xf32> -> vector<4x512xf32>
    %c0_36 = arith.constant 0 : index
    %c0_37 = arith.constant 0 : index
    %68 = vector.load %arg7[%c0_36, %c0_37] : memref<4x512xf32, #tpu.memory_space<vmem>>, vector<4x512xf32>
    %69 = arith.maximumf %68, %67 : vector<4x512xf32>
    %c0_38 = arith.constant 0 : index
    %c0_39 = arith.constant 0 : index
    %70 = vector.load %arg7[%c0_38, %c0_39] : memref<4x512xf32, #tpu.memory_space<vmem>>, vector<4x512xf32>
    tpu.vector_store %arg7[%c0_38, %c0_39], %69 {strides = array<i32>} : memref<4x512xf32, #tpu.memory_space<vmem>>, vector<4x512xf32>,
    %c0_i32_40 = arith.constant 0 : i32
    %71 = arith.cmpi eq, %arg1, %c0_i32_40 : i32
    %72 = arith.extui %71 : i1 to i32
    %c0_i32_41 = arith.constant 0 : i32
    %73 = arith.cmpi ne, %72, %c0_i32_41 : i32
    scf.if %73 {
      %c0_42 = arith.constant 0 : index
      %c0_43 = arith.constant 0 : index
      %74 = vector.load %arg7[%c0_42, %c0_43] : memref<4x512xf32, #tpu.memory_space<vmem>>, vector<4x512xf32>
      %c0_44 = arith.constant 0 : index
      %c0_45 = arith.constant 0 : index
      %75 = vector.load %arg5[%c0_44, %c0_45] : memref<1x512xf32, #tpu.memory_space<vmem>>, vector<1x512xf32>
      %76 = vector.broadcast %75 : vector<1x512xf32> to vector<4x512xf32>
      %77 = arith.addf %74, %76 : vector<4x512xf32>
      %cst_46 = arith.constant 0.000000e+00 : f32
      %78 = vector.broadcast %cst_46 : f32 to vector<4x512xf32>
      %79 = arith.maximumf %77, %78 : vector<4x512xf32>
      %c0_47 = arith.constant 0 : index
      %c0_48 = arith.constant 0 : index
      %80 = vector.load %arg6[%c0_47, %c0_48] : memref<4x512xf32, #tpu.memory_space<vmem>>, vector<4x512xf32>
      tpu.vector_store %arg6[%c0_47, %c0_48], %79 {strides = array<i32>} : memref<4x512xf32, #tpu.memory_space<vmem>>, vector<4x512xf32>,
    } else {
    }
    return
  }
  func.func @transform_0(%arg0: i32, %arg1: i32) -> (i32, i32, i32) {
    %c0_i32 = arith.constant 0 : i32
    %c0_i32_0 = arith.constant 0 : i32
    %c0_i32_1 = arith.constant 0 : i32
    return %arg0, %c0_i32, %c0_i32_0 : i32, i32, i32
  }
  func.func @transform_1(%arg0: i32, %arg1: i32) -> (i32, i32, i32) {
    %c0_i32 = arith.constant 0 : i32
    %c0_i32_0 = arith.constant 0 : i32
    %c0_i32_1 = arith.constant 0 : i32
    %c0_i32_2 = arith.constant 0 : i32
    return %c0_i32, %c0_i32_0, %c0_i32_1 : i32, i32, i32
  }
  func.func @transform_2(%arg0: i32, %arg1: i32) -> (i32, i32, i32) {
    %c0_i32 = arith.constant 0 : i32
    %c0_i32_0 = arith.constant 0 : i32
    %c0_i32_1 = arith.constant 0 : i32
    %c0_i32_2 = arith.constant 0 : i32
    return %c0_i32, %c0_i32_0, %c0_i32_1 : i32, i32, i32
  }
  func.func @transform_3(%arg0: i32, %arg1: i32) -> (i32, i32) {
    %c0_i32 = arith.constant 0 : i32
    %c0_i32_0 = arith.constant 0 : i32
    %c0_i32_1 = arith.constant 0 : i32
    return %c0_i32, %c0_i32_0 : i32, i32
  }
  func.func @transform_4(%arg0: i32, %arg1: i32) -> (i32, i32) {
    %c0_i32 = arith.constant 0 : i32
    %c0_i32_0 = arith.constant 0 : i32
    return %arg0, %c0_i32 : i32, i32
  }
}

</mosaic_0001>

<bundles_post_ra>
// kernel: tpu_custom_call.1
= control target key start
LH: loop header
LB: loop body
LE: loop exit
PB: predicated region body
PF: predicated region fallthrough
CT: control target
= control target key end

     0   :  { %9 = vsyncpa [#allocation4], 0  ;;  %s2430_s0 = inlined_call_operand.vmem [shape: bf16[4,20,32], index: 0, kind: input, shape index: {}]   ;;  %s2431_s1 = inlined_call_operand.hbm [shape: bf16[5,32,256], index: 1, kind: input, shape index: {}]   ;;  %s2432_s2 = inlined_call_operand.hbm [shape: bf16[3,32,256], index: 2, kind: input, shape index: {}]   ;;  %s2433_s3 = inlined_call_operand.vmem [shape: f32[1,512], index: 3, kind: input, shape index: {}]   ;;  %s2434_s4 = inlined_call_operand.hbm [shape: f32[4,512], index: 4, kind: output, shape index: {}]  }
   0x1   :  { %10 = vsyncpa [#allocation7], 0 }
   0x2   :  { %11 = vsyncpa [#allocation5], 0  ;;  %s1845_s15 = smov [#allocation3]   ;;  %s1773_s19 = scalar_lea.hbm %s2431_s1, 2560 }
   0x3   :  { %s19_s16 = sshll.u32 %s1845_s15, 4  ;;  %p1774_p0 = scmp.ne.s32.totalorder %s2431_s1, %s1773_s19  ;;  %s20_s16 = int_to_ptr.vmem [resolvable:$true] %s19_s16 }
   0x4   :  { %p1777_p1 = scmp.lt.u32.totalorder %s1773_s19, %s2431_s1 }
   0x6   :  { %p1779_p2 = pnand %p1777_p1, %p1774_p0 }
   0x8   :  { %1782 = shalt.err (!%p1779_p2)
}
   0x9   :  { %s1783_s24 = scalar_lea.vmem %s20_s16, 2560  ;;  %p1788_p4 = scmp.lt.s32.totalorder %s20_s16, %s20_s16 }
   0xa   :  { %p1784_p3 = scmp.ne.s32.totalorder %s20_s16, %s1783_s24  ;;  %p1789_p5 = scmp.lt.s32.totalorder %s1783_s24, %s1783_s24 }
   0xc   :  { %p1790_p6 = por %p1789_p5, %p1788_p4 }
   0xe   :  { %p1791_p7 = pnand %p1790_p6, %p1784_p3 }
  0x10   :  { %1794 = shalt.err (!%p1791_p7)
}
  0x11   :  { %s1846_s25 = smov 128   ;;  %s1847_s26 = smov 8  }
  0x12   :  { %25 = dma.hbm_to_vmem [thread:$0]  %s2431_s1, 2560, %s20_s16, [#allocation4], %s1846_s25, %s1846_s25, %s1847_s26  }
  0x13   :  { %s1848_s29 = smov [#allocation6]   ;;  %s1795_s7 = scalar_lea.hbm %s2432_s2, 1536 }
  0x14   :  { %s31_s30 = sshll.u32 %s1848_s29, 4  ;;  %p1796_p8 = scmp.ne.s32.totalorder %s2432_s2, %s1795_s7  ;;  %s32_s30 = int_to_ptr.vmem [resolvable:$true] %s31_s30 }
  0x15   :  { %p1799_p9 = scmp.lt.u32.totalorder %s1795_s7, %s2432_s2 }
  0x17   :  { %p1801_p10 = pnand %p1799_p9, %p1796_p8 }
  0x19   :  { %1804 = shalt.err (!%p1801_p10)
}
  0x1a   :  { %s1805_s12 = scalar_lea.vmem %s32_s30, 1536  ;;  %p1810_p12 = scmp.lt.s32.totalorder %s32_s30, %s32_s30 }
  0x1b   :  { %p1806_p11 = scmp.ne.s32.totalorder %s32_s30, %s1805_s12  ;;  %p1811_p13 = scmp.lt.s32.totalorder %s1805_s12, %s1805_s12 }
  0x1d   :  { %p1812_p0 = por %p1811_p13, %p1810_p12 }
  0x1f   :  { %p1813_p1 = pnand %p1812_p0, %p1806_p11 }
  0x21   :  { %1816 = shalt.err (!%p1813_p1)
}
  0x22   :  { %37 = dma.hbm_to_vmem [thread:$0]  %s2432_s2, 1536, %s32_s30, [#allocation7], %s1846_s25, %s1846_s25, %s1847_s26  }
  0x23   :  { %1839 = dma.done.wait [#allocation4], 2560  }
  0x24   :  { %1840 = vsyncadd [#allocation4], 4294964736 }
  0x25   :  { %1841 = dma.done.wait [#allocation7], 1536  }
  0x26   :  { %1842 = vsyncadd [#allocation7], 4294965760  ;;  %v1849_v0 = vmov 0   ;;  %v1721_v1 = vld [vmem:[#allocation3 + $0x4] ss:$8 sps:$4 sm:$0xff]   ;;  %vm210_vm0 = vcmask 261120  }
  0x27   :  { %380 = vmatprep.mubr.bf16.mxu0 %v1849_v0  ;;  %255 = vmatprep.mubr.bf16.mxu1 %v1849_v0  ;;  %v1723_v2 = vld [vmem:[#allocation3 + $0x24] ss:$8 sps:$4 sm:$0xff]   ;;  %v1725_v3 = vld [vmem:[#allocation3] ss:$8 sps:$4 sm:$0xff]   ;;  %v1727_v5 = vld [vmem:[#allocation3 + $0x14] ss:$8 sps:$4 sm:$0xff]  }
  0x28   :  { %348 = vmatprep.subr.bf16.mxu0 %v1721_v1  ;;  %v1726_v4 = vld [vmem:[#allocation3 + $0x20] ss:$8 sps:$4 sm:$0xff]   ;;  %223 = vmatprep.subr.bf16.mxu1 %v1723_v2  ;;  %v1729_v6 = vld [vmem:[#allocation3 + $0x34] ss:$8 sps:$4 sm:$0xff]   ;;  %v1731_v7 = vld [vmem:[#allocation3 + $0x10] ss:$8 sps:$4 sm:$0xff]  }
  0x29   :  { %349 = vmatpush1.bf16.msra.mxu0 %v1725_v3  ;;  %224 = vmatpush1.bf16.msra.mxu1 %v1726_v4  ;;  %v1732_v8 = vld [vmem:[#allocation3 + $0x30] ss:$8 sps:$4 sm:$0xff]   ;;  %v1910_v10 = vld [vmem:[%s2430_s0 + $0x4] sm:$0xf]  ;;  %v1734_v12 = vld [vmem:[#allocation3 + $0x40] ss:$8 sps:$4 sm:$0xff]  }
  0x2a   :  { %350 = vmatprep.subr.bf16.mxu0 %v1727_v5  ;;  %v1905_v9 = vld [vmem:[%s2430_s0] sm:$0xf]  ;;  %225 = vmatprep.subr.bf16.mxu1 %v1729_v6  ;;  %v1736_v13 = vld [vmem:[#allocation3 + $0x44] ss:$8 sps:$4 sm:$0xff]   ;;  %v1920_v15 = vld [vmem:[%s2430_s0 + $0x8] sm:$0x3] }
  0x2b   :  { %v1914_v11 = vcombine.low %v1905_v9, %v1910_v10  ;;  %v83_v14 = vshrl.u32 %v1905_v9, 16  ;;  %v86_v16 = vshll.u32 %v1905_v9, 16  ;;  %v92_v17 = vshll.u32 %v1910_v10, 16  ;;  %v1739_v24 = vld [vmem:[#allocation6 + $0x24] ss:$8 sps:$4 sm:$0xff]  }
  0x2c   :  { %v96_v18 = vshrl.u32 %v1910_v10, 16  ;;  %vm79_vm1 = vsmask.f32 3328  ;;  %v102_v20 = vshll.u32 %v1920_v15, 16  ;;  %vm80_vm2 = vsmask.f32 7440 }
  0x2d   :  { %351 = vmatpush1.bf16.msra.mxu0 %v1731_v7  ;;  %226 = vmatpush1.bf16.msra.mxu1 %v1732_v8  ;;  %v85_v19 = vrot.slane %v83_v14, 4  ;;  %v88_v21 = vrot.slane %v86_v16, 5  ;;  %v94_v22 = vrot.slane %v92_v17, 5  ;;  %v1942_v28 = vld [vmem:[%s2430_s0 + $0xc] sm:$0xf]  ;;  %vm1950_vm3 = vmor %vm79_vm1, %vm80_vm2  ;;  %vm430_vm4 = vcmask 1042432  }
  0x2e   :  { %505 = vmatprep.subr.bf16.mxu0 %v1736_v13  ;;  %v98_v23 = vrot.slane %v96_v18, 4  ;;  %v104_v27 = vrot.slane %v102_v20, 5  ;;  %v1947_v29 = vld [vmem:[%s2430_s0 + $0x10] sm:$0xf]  ;;  %993 = vmatprep.subr.bf16.mxu1 %v1739_v24  ;;  %v1957_v31 = vld [vmem:[%s2430_s0 + $0x14] sm:$0x3] }
  0x2f   :  { %v89_v25 = vor.u32 %v88_v21, %v85_v19  ;;  %v107_v32 = vshrl.u32 %v1942_v28, 16  ;;  %v1737_v35 = vld [vmem:[#allocation6 + $0x20] ss:$8 sps:$4 sm:$0xff]   ;;  %v110_v36 = vshll.u32 %v1942_v28, 16  ;;  %v1968_v38 = vcombine.low %v1942_v28, %v1947_v29  ;;  %v1976_v41 = vld [vmem:[%s2430_s0 + $0x1c] sm:$0xf] }
  0x30   :  { %1547 = vmatmul.mubr.msk.bf16.vlgmr.msra.gmra.mrb[0].mxu0 %vm210_vm0, %v1914_v11  ;;  %v99_v26 = vor.u32 %v98_v23, %v94_v22  ;;  %v1964_v37 = vld [vmem:[%s2430_s0 + $0x18] sm:$0xf]  ;;  %v116_v40 = vshll.u32 %v1947_v29, 16  ;;  %v120_v45 = vshrl.u32 %v1947_v29, 16  ;;  %v1744_v46 = vld [vmem:[#allocation3 + $0x54] ss:$8 sps:$4 sm:$0xff]  }
  0x31   :  { %506 = vmatpush1.bf16.msra.mxu0 %v1734_v12  ;;  %390 = vmatprep.mubr.bf16.mxu0 %v1849_v0  ;;  %v90_v33 = vrot.slane %v89_v25, 4  ;;  %v109_v39 = vrot.slane %v107_v32, 4  ;;  %v112_v44 = vrot.slane %v110_v36, 5  ;;  %v1988_v47 = vld [vmem:[%s2430_s0 + $0x20] sm:$0x3]  ;;  %v126_v50 = vshll.u32 %v1957_v31, 16 }
  0x32   :  { %v100_v34 = vrot.slane %v99_v26, 4  ;;  %v118_v49 = vrot.slane %v116_v40, 5  ;;  %v1742_v51 = vld [vmem:[#allocation3 + $0x50] ss:$8 sps:$4 sm:$0xff]   ;;  %v122_v53 = vrot.slane %v120_v45, 4  ;;  %507 = vmatprep.subr.bf16.mxu0 %v1744_v46  ;;  %v131_v54 = vshrl.u32 %v1964_v37, 16 }
  0x33   :  { %v95_v42 = vsel %vm1950_vm3, %v90_v33, %v94_v22  ;;  %v113_v52 = vor.u32 %v112_v44, %v109_v39  ;;  %v134_v55 = vshll.u32 %v1964_v37, 16  ;;  %v1745_v56 = vld [vmem:[#allocation6 + $0x30] ss:$8 sps:$4 sm:$0xff]   ;;  %v1747_v57 = vld [vmem:[#allocation6 + $0x34] ss:$8 sps:$4 sm:$0xff]   ;;  %v128_v58 = vrot.slane %v126_v50, 5 }
  0x34   :  { %v105_v43 = vsel %vm1950_vm3, %v100_v34, %v104_v27  ;;  %v140_v59 = vshll.u32 %v1976_v41, 16  ;;  %v144_v60 = vshrl.u32 %v1976_v41, 16  ;;  %v150_v61 = vshll.u32 %v1988_v47, 16  ;;  %v2011_v62 = vld [vmem:[%s2430_s0 + $0x24] sm:$0xf] }
  0x35   :  { %v1990_v48 = vcombine.low %v95_v42, %v105_v43  ;;  %v114_v63 = vrot.slane %v113_v52, 4  ;;  %v123_v1 = vor.u32 %v122_v53, %v118_v49  ;;  %v133_v2 = vrot.slane %v131_v54, 4  ;;  %v2021_v4 = vld [vmem:[%s2430_s0 + $0x28] sm:$0xf]  ;;  %508 = vmatpush1.bf16.msra.mxu0 %v1742_v51  ;;  %v1751_v21 = vld [vmem:[#allocation3 + $0x64] ss:$8 sps:$4 sm:$0xff]  }
  0x36   :  { %v136_v3 = vrot.slane %v134_v55, 5  ;;  %v2026_v5 = vcombine.low %v1964_v37, %v1976_v41  ;;  %v142_v6 = vrot.slane %v140_v59, 5  ;;  %v146_v7 = vrot.slane %v144_v60, 4  ;;  %706 = vmatprep.subr.bf16.mxu0 %v1751_v21  ;;  %v2049_v43 = vld [vmem:[%s2430_s0 + $0x2c] sm:$0x3] }
  0x37   :  { %1535 = vmatmul.mubr.msk.bf16.vlgmr.msra.gmra.mrb[0].mxu1 %vm210_vm0, %v1990_v48  ;;  %v119_v8 = vsel %vm1950_vm3, %v114_v63, %v118_v49  ;;  %v124_v12 = vrot.slane %v123_v1, 4  ;;  %v155_v19 = vshrl.u32 %v2011_v62, 16  ;;  %v158_v23 = vshll.u32 %v2011_v62, 16 }
  0x38   :  { %1548 = vmatmul.mubr.msk.bf16.gmra.mrb[4].mxu0 %vm210_vm0, %v1968_v38  ;;  %994 = vmatpush1.bf16.msra.mxu1 %v1737_v35  ;;  %v137_v13 = vor.u32 %v136_v3, %v133_v2  ;;  %v147_v22 = vor.u32 %v146_v7, %v142_v6  ;;  %v2436_v24 = vshll.u32 %v2021_v4, 16  ;;  %v2437_v25 = vshrl.u32 %v2021_v4, 16  ;;  %v1754_v35 = vld [vmem:[#allocation6 + $0x4] ss:$8 sps:$4 sm:$0xff]  }
  0x39   :  { %265 = vmatprep.mubr.bf16.mxu1 %v1849_v0  ;;  %400 = vmatprep.mubr.bf16.mxu0 %v1849_v0  ;;  %v129_v26 = vsel %vm1950_vm3, %v124_v12, %v128_v58  ;;  %v152_v33 = vrot.slane %v150_v61, 5  ;;  %v157_v34 = vrot.slane %v155_v19, 4  ;;  %v160_v44 = vrot.slane %v158_v23, 5 }
  0x3a   :  { %995 = vmatprep.subr.bf16.mxu1 %v1747_v57  ;;  %v138_v27 = vrot.slane %v137_v13, 4  ;;  %v2044_v39 = vcombine.low %v119_v8, %v129_v26  ;;  %v148_v42 = vrot.slane %v147_v22, 4  ;;  %v166_v46 = vrot.slane %v2436_v24, 5 }
  0x3b   :  { %v170_v49 = vrot.slane %v2437_v25, 4  ;;  %v435_v51 = vrot.slane %v1910_v10, 5  ;;  %v2435_v58 = vshll.u32 %v2049_v43, 16  ;;  %vm431_vm5 = vcmask 1046532  }
  0x3c   :  { %996 = vmatpush1.bf16.msra.mxu1 %v1745_v56  ;;  %v143_v52 = vsel %vm1950_vm3, %v138_v27, %v142_v6  ;;  %v153_v53 = vsel %vm1950_vm3, %v148_v42, %v152_v33  ;;  %v161_v56 = vor.u32 %v160_v44, %v157_v34  ;;  %v1551_v63 = vrot.slane %v1905_v9, 9  ;;  %vm2078_vm6 = vmor %vm430_vm4, %vm431_vm5  ;;  %v1749_v44 = vld [vmem:[#allocation3 + $0x60] ss:$8 sps:$4 sm:$0xff]  }
  0x3d   :  { %1086 = vmatprep.subr.bf16.mxu1 %v1754_v35  ;;  %v171_v57 = vor.u32 %v170_v49, %v166_v46  ;;  %v437_v1 = vrot.slane %v435_v51, 4  ;;  %v2070_v2 = vcombine.low %v143_v52, %v153_v53  ;;  %v2074_v3 = vcombine.low %v2011_v62, %v2021_v4  ;;  %v1757_v52 = vld [vmem:[#allocation3 + $0x74] ss:$8 sps:$4 sm:$0xff]  }
  0x3e   :  { %v162_v6 = vrot.slane %v161_v56, 4  ;;  %v176_v8 = vrot.slane %v2435_v58, 5  ;;  %v438_v13 = vrot.slane %v1920_v15, 5  ;;  %v436_v21 = vsel %vm2078_vm6, %v1551_v63, %v435_v51  ;;  %v1760_v58 = vld [vmem:[#allocation6 + $0x14] ss:$8 sps:$4 sm:$0xff]  }
  0x3f   :  { %1536 = vmatmul.mubr.msk.bf16.gmra.mrb[4].mxu1 %vm210_vm0, %v2044_v39  ;;  %v172_v7 = vrot.slane %v171_v57, 4  ;;  %v442_v33 = vrot.slane %v1947_v29, 5  ;;  %vm800_vm7 = vcmask 1041408   ;;  %v805_v34 = vrot.slane %v1910_v10, 6 }
  0x40   :  { %1549 = vmatmul.mubr.msk.bf16.gmra.mrb[8].mxu0 %vm210_vm0, %v2026_v5  ;;  %275 = vmatprep.mubr.bf16.mxu1 %v1849_v0  ;;  %v167_v22 = vsel %vm1950_vm3, %v162_v6, %v166_v46  ;;  %v439_v27 = vsel %vm2078_vm6, %v437_v1, %v438_v13  ;;  %vm801_vm8 = vcmask 1045508   ;;  %v1552_v46 = vrot.slane %v1942_v28, 9  ;;  %v1755_v6 = vld [vmem:[#allocation3 + $0x70] ss:$8 sps:$4 sm:$0xff]  }
  0x41   :  { %410 = vmatprep.mubr.bf16.mxu0 %v1849_v0  ;;  %v177_v26 = vsel %vm1950_vm3, %v172_v7, %v176_v8  ;;  %v2101_v42 = vcombine.low %v436_v21, %v439_v27  ;;  %v444_v30 = vrot.slane %v442_v33, 4  ;;  %v445_v49 = vrot.slane %v1957_v31, 5  ;;  %vm2107_vm9 = vmor %vm800_vm7, %vm801_vm8  ;;  %v1763_v7 = vld [vmem:[#allocation3 + $0x84] ss:$8 sps:$4 sm:$0xff]  }
  0x42   :  { %v2099_v35 = vcombine.low %v167_v22, %v177_v26  ;;  %v1579_v51 = vrot.slane %v1905_v9, 10  ;;  %v449_v53 = vrot.slane %v1976_v41, 5  ;;  %v807_v57 = vrot.slane %v805_v34, 4 }
  0x43   :  { %v443_v63 = vsel %vm2078_vm6, %v1552_v46, %v442_v33  ;;  %v446_v1 = vsel %vm2078_vm6, %v444_v30, %v445_v49  ;;  %v808_v13 = vrot.slane %v1920_v15, 6  ;;  %v1553_v21 = vrot.slane %v1964_v37, 9  ;;  %v1752_v30 = vld [vmem:[#allocation6] ss:$8 sps:$4 sm:$0xff]  }
  0x44   :  { %v2123_v8 = vsel %vm2107_vm9, %v1579_v51, %v805_v34  ;;  %v451_v22 = vrot.slane %v449_v53, 4  ;;  %v452_v26 = vrot.slane %v1988_v47, 5  ;;  %v1580_v27 = vrot.slane %v1942_v28, 10 }
  0x45   :  { %v2129_v33 = vcombine.low %v443_v63, %v446_v1  ;;  %v812_v46 = vrot.slane %v1947_v29, 6  ;;  %v815_v34 = vrot.slane %v1957_v31, 6  ;;  %v1581_v51 = vrot.slane %v1964_v37, 10 }
  0x46   :  { %v822_v1 = vrot.slane %v1988_v47, 6  ;;  %v826_v25 = vrot.slane %v2021_v4, 6  ;;  %v1554_v9 = vrot.slane %v2011_v62, 9  ;;  %v614_v56 = vrot.slane %v102_v20, 6 }
  0x47   :  { %1537 = vmatmul.mubr.msk.bf16.gmra.mrb[8].mxu1 %vm210_vm0, %v2070_v2  ;;  %v2143_v63 = vsel %vm2107_vm9, %v1580_v27, %v812_v46  ;;  %v456_v27 = vrot.slane %v2021_v4, 5  ;;  %vm599_vm10 = vsmask.f32 2304  ;;  %vm600_vm11 = vsmask.f32 6416 }
  0x48   :  { %1550 = vmatmul.mubr.msk.bf16.gmra.mrb[12].mxu0 %vm210_vm0, %v2074_v3  ;;  %285 = vmatprep.mubr.bf16.mxu1 %v1849_v0  ;;  %vm2217_vm12 = vmor %vm599_vm10, %vm600_vm11  ;;  %v621_v12 = vrot.slane %v120_v45, 5  ;;  %v629_v45 = vrot.slane %v126_v50, 6  ;;  %v1769_v50 = vld [vmem:[#allocation3 + $0x94] ss:$8 sps:$4 sm:$0xff]   ;;  %v644_v37 = vrot.slane %v150_v61, 6  ;;  %vm1443_vm15 = vcmask 1041409  }
  0x49   :  { %537 = vmatprep.mubr.bf16.mxu0 %v1849_v0  ;;  %vm1447_vm1 = vcmask 1043459  }
  0x4f   :  { %1538 = vmatmul.mubr.msk.bf16.gmra.mrb[12].mxu1 %vm210_vm0, %v2099_v35 }
  0x50   :  { %1563 = vmatmul.mubr.msk.bf16.vlgmr.msra.gmra.mrb[0].mxu0 %vm210_vm0, %v2101_v42  ;;  %1025 = vmatprep.mubr.bf16.mxu1 %v1849_v0 }
  0x51   :  { %707 = vmatpush1.bf16.msra.mxu0 %v1749_v44  ;;  %547 = vmatprep.mubr.bf16.mxu0 %v1849_v0  ;;  %v2133_v44 = vsel %vm2107_vm9, %v807_v57, %v808_v13  ;;  %v814_v57 = vrot.slane %v812_v46, 4  ;;  %v1582_v13 = vrot.slane %v2011_v62, 10  ;;  %v1758_v46 = vld [vmem:[#allocation6 + $0x10] ss:$8 sps:$4 sm:$0xff]  }
  0x52   :  { %708 = vmatprep.subr.bf16.mxu0 %v1757_v52  ;;  %v819_v52 = vrot.slane %v1976_v41, 6 }
  0x54   :  { %v2151_v49 = vsel %vm2107_vm9, %v1581_v51, %v819_v52  ;;  %v821_v24 = vrot.slane %v819_v52, 4 }
  0x55   :  { %709 = vmatpush1.bf16.msra.mxu0 %v1755_v6  ;;  %v450_v6 = vsel %vm2078_vm6, %v1553_v21, %v449_v53  ;;  %v2163_v53 = vsel %vm2107_vm9, %v814_v57, %v815_v34  ;;  %v829_v21 = vrot.slane %v2049_v43, 6  ;;  %v602_v34 = vrot.slane %v83_v14, 5 }
  0x56   :  { %875 = vmatprep.subr.bf16.mxu0 %v1763_v7  ;;  %v453_v7 = vsel %vm2078_vm6, %v451_v22, %v452_v26  ;;  %v2171_v51 = vsel %vm2107_vm9, %v821_v24, %v822_v1  ;;  %v2175_v22 = vsel %vm2107_vm9, %v1582_v13, %v826_v25  ;;  %v828_v26 = vrot.slane %v826_v25, 4 }
  0x57   :  { %1599 = vmatmul.mubr.msk.bf16.vlgmr.msra.gmra.mrb[16].mxu1 %vm210_vm0, %v1990_v48  ;;  %v1584_v48 = vcombine.low %v2143_v63, %v2163_v53  ;;  %v603_v57 = vrot.slane %v86_v16, 6  ;;  %v606_v24 = vrot.slane %v96_v18, 5  ;;  %v607_v1 = vrot.slane %v92_v17, 6 }
  0x58   :  { %1564 = vmatmul.mubr.msk.bf16.gmra.mrb[4].mxu0 %vm210_vm0, %v2129_v33  ;;  %1087 = vmatpush1.bf16.msra.mxu1 %v1752_v30  ;;  %v1766_v30 = vld [vmem:[#allocation6 + $0x44] ss:$8 sps:$4 sm:$0xff]   ;;  %v2190_v25 = vsel %vm2107_vm9, %v828_v26, %v829_v21  ;;  %v611_v14 = vshrl.u32 %v1920_v15, 16  ;;  %v458_v16 = vrot.slane %v456_v27, 4  ;;  %v459_v18 = vrot.slane %v2049_v43, 5 }
  0x59   :  { %1035 = vmatprep.mubr.bf16.mxu1 %v1849_v0  ;;  %557 = vmatprep.mubr.bf16.mxu0 %v1849_v0  ;;  %v1586_v13 = vcombine.low %v2175_v22, %v2190_v25  ;;  %v604_v10 = vor.u32 %v603_v57, %v602_v34  ;;  %v608_v17 = vor.u32 %v607_v1, %v606_v24  ;;  %v618_v26 = vrot.slane %v110_v36, 6 }
  0x5a   :  { %1088 = vmatprep.subr.bf16.mxu1 %v1760_v58  ;;  %v2193_v58 = vcombine.low %v450_v6, %v453_v7  ;;  %v613_v52 = vrot.slane %v611_v14, 5  ;;  %v457_v6 = vsel %vm2078_vm6, %v1554_v9, %v456_v27  ;;  %v460_v7 = vsel %vm2078_vm6, %v458_v16, %v459_v18  ;;  %v1761_v14 = vld [vmem:[#allocation3 + $0x80] ss:$8 sps:$4 sm:$0xff]  }
  0x5b   :  { %v605_v15 = vrot.slane %v604_v10, 4  ;;  %v610_v20 = vrot.slane %v608_v17, 4  ;;  %v622_v27 = vrot.slane %v116_v40, 6  ;;  %v632_v57 = vrot.slane %v131_v54, 5  ;;  %v1767_v10 = vld [vmem:[#allocation3 + $0x90] ss:$8 sps:$4 sm:$0xff]  }
  0x5c   :  { %1089 = vmatpush1.bf16.msra.mxu1 %v1758_v46  ;;  %v615_v21 = vor.u32 %v614_v56, %v613_v52  ;;  %v2211_v46 = vcombine.low %v457_v6, %v460_v7  ;;  %v633_v24 = vrot.slane %v134_v55, 6  ;;  %v636_v1 = vrot.slane %v144_v60, 5  ;;  %v1764_v7 = vld [vmem:[#allocation6 + $0x40] ss:$8 sps:$4 sm:$0xff]  }
  0x5d   :  { %1184 = vmatprep.subr.bf16.mxu1 %v1766_v30  ;;  %v626_v30 = vshrl.u32 %v1957_v31, 16  ;;  %v609_v28 = vsel %vm2217_vm12, %v605_v15, %v608_v17  ;;  %v623_v29 = vor.u32 %v622_v27, %v621_v12  ;;  %v637_v18 = vrot.slane %v140_v59, 6  ;;  %v1772_v12 = vld [vmem:[#allocation6 + $0x54] ss:$8 sps:$4 sm:$0xff]  }
  0x5e   :  { %v641_v31 = vshrl.u32 %v1988_v47, 16  ;;  %v634_v54 = vor.u32 %v633_v24, %v632_v57  ;;  %v648_v17 = vrot.slane %v158_v23, 6  ;;  %v2446_v56 = vshrl.u32 %v2021_v4, 16 }
  0x5f   :  { %1600 = vmatmul.mubr.msk.bf16.gmra.mrb[20].mxu1 %vm210_vm0, %v2044_v39  ;;  %v617_v39 = vrot.slane %v107_v32, 5  ;;  %v616_v32 = vsel %vm2217_vm12, %v610_v20, %v615_v21  ;;  %v628_v40 = vrot.slane %v626_v30, 5  ;;  %v625_v9 = vrot.slane %v623_v29, 4 }
  0x60   :  { %1565 = vmatmul.mubr.msk.bf16.gmra.mrb[8].mxu0 %vm210_vm0, %v2193_v58  ;;  %1045 = vmatprep.mubr.bf16.mxu1 %v1849_v0  ;;  %v638_v59 = vor.u32 %v637_v18, %v636_v1  ;;  %v643_v60 = vrot.slane %v641_v31, 5  ;;  %v635_v61 = vrot.slane %v634_v54, 4  ;;  %v651_v6 = vrot.slane %v2446_v56, 5 }
  0x61   :  { %567 = vmatprep.mubr.bf16.mxu0 %v1849_v0  ;;  %v619_v36 = vor.u32 %v618_v26, %v617_v39  ;;  %v630_v16 = vor.u32 %v629_v45, %v628_v40  ;;  %v2447_v21 = vshll.u32 %v2021_v4, 16  ;;  %v656_v26 = vshrl.u32 %v2049_v43, 16  ;;  %v1770_v4 = vld [vmem:[#allocation6 + $0x50] ss:$8 sps:$4 sm:$0xff]  }
  0x62   :  { %v640_v15 = vrot.slane %v638_v59, 4  ;;  %v645_v20 = vor.u32 %v644_v37, %v643_v60  ;;  %v639_v62 = vsel %vm2217_vm12, %v635_v61, %v638_v59  ;;  %v1273_v34 = vlaneseq }
  0x63   :  { %v620_v52 = vrot.slane %v619_v36, 4  ;;  %v631_v41 = vsel %vm2217_vm12, %v625_v9, %v630_v16  ;;  %v652_v39 = vrot.slane %v2447_v21, 6  ;;  %v658_v30 = vrot.slane %v656_v26, 5 }
  0x64   :  { %v646_v23 = vsel %vm2217_vm12, %v640_v15, %v645_v20 }
  0x65   :  { %v624_v55 = vsel %vm2217_vm12, %v620_v52, %v623_v29  ;;  %v653_v27 = vor.u32 %v652_v39, %v651_v6  ;;  %v2341_v52 = vshrl.u32 %v1273_v34, 7 }
  0x66   :  { %v1568_v47 = vcombine.low %v624_v55, %v631_v41 }
  0x67   :  { %1601 = vmatmul.mubr.msk.bf16.gmra.mrb[24].mxu1 %vm210_vm0, %v2070_v2  ;;  %v1567_v2 = vcombine.low %v609_v28, %v616_v32  ;;  %v2448_v28 = vshll.u32 %v2049_v43, 16  ;;  %v655_v29 = vrot.slane %v653_v27, 4  ;;  %v2344_v57 = vadd.s32 8, %v2341_v52 }
  0x68   :  { %1566 = vmatmul.mubr.msk.bf16.gmra.mrb[12].mxu0 %vm210_vm0, %v2211_v46  ;;  %1055 = vmatprep.mubr.bf16.mxu1 %v1849_v0 }
  0x69   :  { %738 = vmatprep.mubr.bf16.mxu0 %v1849_v0  ;;  %v659_v32 = vrot.slane %v2448_v28, 6  ;;  %vm1280_vm13 = vcmp.lt.s32.totalorder %v2344_v57, 12  ;;  %vm1302_vm14 = vcmp.lt.s32.totalorder %v2344_v57, 14 }
  0x6b   :  { %v660_v40 = vor.u32 %v659_v32, %v658_v30 }
  0x6d   :  { %v661_v45 = vsel %vm2217_vm12, %v655_v29, %v660_v40 }
  0x6f   :  { %1602 = vmatmul.mubr.msk.bf16.gmra.mrb[28].mxu1 %vm210_vm0, %v2099_v35  ;;  %v647_v35 = vrot.slane %v155_v19, 5 }
  0x70   :  { %1575 = vmatmul.mubr.msk.bf16.vlgmr.msra.gmra.mrb[0].mxu0 %vm210_vm0, %v1567_v2  ;;  %1118 = vmatprep.mubr.bf16.mxu1 %v1849_v0 }
  0x71   :  { %876 = vmatpush1.bf16.msra.mxu0 %v1761_v14  ;;  %748 = vmatprep.mubr.bf16.mxu0 %v1849_v0  ;;  %v649_v19 = vor.u32 %v648_v17, %v647_v35 }
  0x72   :  { %877 = vmatprep.subr.bf16.mxu0 %v1769_v50 }
  0x73   :  { %v650_v36 = vrot.slane %v649_v19, 4 }
  0x75   :  { %878 = vmatpush1.bf16.msra.mxu0 %v1767_v10  ;;  %v654_v43 = vsel %vm2217_vm12, %v650_v36, %v653_v27 }
  0x76   :  { %v1570_v2 = vcombine.low %v654_v43, %v661_v45 }
  0x77   :  { %1607 = vmatmul.mubr.msk.bf16.vlgmr.msra.gmra.mrb[16].mxu1 %vm210_vm0, %v1914_v11  ;;  %v1569_v11 = vcombine.low %v639_v62, %v646_v23 }
  0x78   :  { %1576 = vmatmul.mubr.msk.bf16.gmra.mrb[4].mxu0 %vm210_vm0, %v1568_v47  ;;  %1185 = vmatpush1.bf16.msra.mxu1 %v1764_v7 }
  0x79   :  { %1128 = vmatprep.mubr.bf16.mxu1 %v1849_v0  ;;  %758 = vmatprep.mubr.bf16.mxu0 %v1849_v0 }
  0x7a   :  { %1186 = vmatprep.subr.bf16.mxu1 %v1772_v12 }
  0x7c   :  { %1187 = vmatpush1.bf16.msra.mxu1 %v1770_v4 }
  0x7f   :  { %1608 = vmatmul.mubr.msk.bf16.gmra.mrb[20].mxu1 %vm210_vm0, %v1968_v38  ;;  %v2449_v38 = vcombine.low %v2123_v8, %v2133_v44 }
  0x80   :  { %1577 = vmatmul.mubr.msk.bf16.gmra.mrb[8].mxu0 %vm210_vm0, %v1569_v11  ;;  %1138 = vmatprep.mubr.bf16.mxu1 %v1849_v0 }
  0x81   :  { %768 = vmatprep.mubr.bf16.mxu0 %v1849_v0 }
  0x87   :  { %1609 = vmatmul.mubr.msk.bf16.gmra.mrb[24].mxu1 %vm210_vm0, %v2026_v5  ;;  %v2450_v5 = vcombine.low %v2151_v49, %v2171_v51 }
  0x88   :  { %1578 = vmatmul.mubr.msk.bf16.gmra.mrb[12].mxu0 %vm210_vm0, %v1570_v2  ;;  %1148 = vmatprep.mubr.bf16.mxu1 %v1849_v0 }
  0x89   :  { %907 = vmatprep.mubr.bf16.mxu0 %v1849_v0 }
  0x8f   :  { %1610 = vmatmul.mubr.msk.bf16.gmra.mrb[28].mxu1 %vm210_vm0, %v2074_v3 }
  0x90   :  { %1591 = vmatmul.mubr.msk.bf16.vlgmr.msra.gmra.mrb[0].mxu0 %vm210_vm0, %v2449_v38  ;;  %1216 = vmatprep.mubr.bf16.mxu1 %v1849_v0 }
  0x91   :  { %917 = vmatprep.mubr.bf16.mxu0 %v1849_v0 }
  0x97   :  { %1615 = vmatmul.mubr.msk.bf16.vlgmr.msra.gmra.mrb[16].mxu1 %vm210_vm0, %v2101_v42 }
  0x98   :  { %1592 = vmatmul.mubr.msk.bf16.gmra.mrb[4].mxu0 %vm210_vm0, %v1584_v48  ;;  %1226 = vmatprep.mubr.bf16.mxu1 %v1849_v0 }
  0x99   :  { %927 = vmatprep.mubr.bf16.mxu0 %v1849_v0 }
  0x9f   :  { %1616 = vmatmul.mubr.msk.bf16.gmra.mrb[20].mxu1 %vm210_vm0, %v2129_v33 }
  0xa0   :  { %1593 = vmatmul.mubr.msk.bf16.gmra.mrb[8].mxu0 %vm210_vm0, %v2450_v5  ;;  %1236 = vmatprep.mubr.bf16.mxu1 %v1849_v0 }
  0xa1   :  { %937 = vmatprep.mubr.bf16.mxu0 %v1849_v0 }
  0xa7   :  { %1617 = vmatmul.mubr.msk.bf16.gmra.mrb[24].mxu1 %vm210_vm0, %v2193_v58 }
  0xa8   :  { %1594 = vmatmul.mubr.msk.bf16.gmra.mrb[12].mxu0 %vm210_vm0, %v1586_v13  ;;  %1246 = vmatprep.mubr.bf16.mxu1 %v1849_v0 }
  0xaf   :  { %1618 = vmatmul.mubr.msk.bf16.gmra.mrb[28].mxu1 %vm210_vm0, %v2211_v46  ;;  %vm1445_vm0 = vcmask 1042434  }
 0x10a   :  { %v257_v3 = vpop.f32.mrb[0].mxu1 }
 0x10b   :  { %v259_v42 = vpop.f32.mrb[1].mxu1 }
 0x10c   :  { %v261_v8 = vpop.f32.mrb[2].mxu1 }
 0x10d   :  { %v263_v33 = vpop.f32.mrb[3].mxu1 }
 0x112   :  { %v267_v44 = vpop.f32.mrb[4].mxu1 }
 0x113   :  { %v269_v49 = vpop.f32.mrb[5].mxu1 }
 0x114   :  { %v271_v63 = vpop.f32.mrb[6].mxu1 }
 0x115   :  { %v273_v53 = vpop.f32.mrb[7].mxu1 }
 0x11a   :  { %v2325_v48 = vpop.f32.mrb[8].mxu1 }
 0x11b   :  { %v2327_v51 = vpop.f32.mrb[9].mxu1 }
 0x11c   :  { %v2329_v22 = vpop.f32.mrb[10].mxu1 }
 0x11d   :  { %v2331_v25 = vpop.f32.mrb[11].mxu1 }
 0x122   :  { %v2333_v0 = vpop.f32.mrb[12].mxu1 }
 0x123   :  { %v2335_v58 = vpop.f32.mrb[13].mxu1 }
 0x124   :  { %v2337_v13 = vpop.f32.mrb[14].mxu1 }
 0x125   :  { %v2339_v46 = vpop.f32.mrb[15].mxu1 }
 0x163   :  { %v909_v24 = vpop.f32.mrb[0].mxu0 }
 0x164   :  { %v1619_v1 = vadd.f32 %v909_v24, %v257_v3  ;;  %v911_v14 = vpop.f32.mrb[1].mxu0 }
 0x165   :  { %v1620_v9 = vadd.f32 %v911_v14, %v259_v42  ;;  %v913_v16 = vpop.f32.mrb[2].mxu0 }
 0x166   :  { %v1621_v18 = vadd.f32 %v913_v16, %v261_v8  ;;  %v915_v31 = vpop.f32.mrb[3].mxu0  ;;  %v1485_v8 = vsub.s32 0, %v2341_v52 }
 0x167   :  { %v1622_v50 = vadd.f32 %v915_v31, %v263_v33 }
 0x168   :  { %v1287_v54 = vsel %vm1280_vm13, %v1621_v18, -3e+38 }
 0x169   :  { %v1323_v37 = vmax.f32 %v1619_v1, %v1287_v54  ;;  %v1288_v55 = vsel %vm1280_vm13, %v1622_v50, -3e+38 }
 0x16a   :  { %v1330_v41 = vmax.f32 %v1620_v9, %v1288_v55  ;;  %v1218_v59 = vpop.f32.mrb[16].mxu1 }
 0x16b   :  { %v1324_v60 = vrot.slane %v1323_v37, 4  ;;  %v919_v10 = vpop.f32.mrb[4].mxu0  ;;  %v1220_v35 = vpop.f32.mrb[17].mxu1 }
 0x16c   :  { %v1331_v47 = vrot.slane %v1330_v41, 4  ;;  %v1623_v61 = vadd.f32 %v919_v10, %v267_v44  ;;  %v921_v17 = vpop.f32.mrb[5].mxu0  ;;  %v1222_v6 = vpop.f32.mrb[18].mxu1 }
 0x16d   :  { %v1325_v56 = vmax.f32 %v1323_v37, %v1324_v60  ;;  %v1624_v7 = vadd.f32 %v921_v17, %v269_v49  ;;  %v923_v15 = vpop.f32.mrb[6].mxu0  ;;  %v1309_v21 = vsel %vm1302_vm14, %v1222_v6, -3e+38  ;;  %v1224_v39 = vpop.f32.mrb[19].mxu1 }
 0x16e   :  { %v1332_v20 = vmax.f32 %v1330_v41, %v1331_v47  ;;  %v1625_v26 = vadd.f32 %v923_v15, %v271_v63  ;;  %v925_v12 = vpop.f32.mrb[7].mxu0  ;;  %v1379_v19 = vmax.f32 %v1218_v59, %v1309_v21  ;;  %v1310_v23 = vsel %vm1302_vm14, %v1224_v39, -3e+38 }
 0x16f   :  { %v1326_v62 = vrot.slane %v1325_v56, 2  ;;  %v1626_v4 = vadd.f32 %v925_v12, %v273_v53  ;;  %v1386_v30 = vmax.f32 %v1220_v35, %v1310_v23 }
 0x170   :  { %v1333_v27 = vrot.slane %v1332_v20, 2  ;;  %v1291_v28 = vsel %vm1280_vm13, %v1625_v26, -3e+38  ;;  %v1380_v11 = vrot.slane %v1379_v19, 4 }
 0x171   :  { %v1327_v32 = vmax.f32 %v1325_v56, %v1326_v62  ;;  %v1337_v36 = vmax.f32 %v1623_v61, %v1291_v28  ;;  %v1292_v29 = vsel %vm1280_vm13, %v1626_v4, -3e+38  ;;  %v1387_v43 = vrot.slane %v1386_v30, 4 }
 0x172   :  { %v1334_v40 = vmax.f32 %v1332_v20, %v1333_v27  ;;  %v1344_v45 = vmax.f32 %v1624_v7, %v1292_v29  ;;  %v1381_v38 = vmax.f32 %v1379_v19, %v1380_v11  ;;  %v1228_v5 = vpop.f32.mrb[20].mxu1 }
 0x173   :  { %v1328_v2 = vrot.slane %v1327_v32, 1  ;;  %v1338_v3 = vrot.slane %v1337_v36, 4  ;;  %v929_v42 = vpop.f32.mrb[8].mxu0  ;;  %v1388_v44 = vmax.f32 %v1386_v30, %v1387_v43  ;;  %v1230_v49 = vpop.f32.mrb[21].mxu1 }
 0x174   :  { %v1335_v33 = vrot.slane %v1334_v40, 1  ;;  %v1345_v63 = vrot.slane %v1344_v45, 4  ;;  %v1627_v53 = vadd.f32 %v929_v42, %v2325_v48  ;;  %v931_v34 = vpop.f32.mrb[9].mxu0  ;;  %v1382_v1 = vrot.slane %v1381_v38, 2  ;;  %v1232_v9 = vpop.f32.mrb[22].mxu1 }
 0x175   :  { %v2362_v24 = vmax.f32 %v1327_v32, %v1328_v2  ;;  %v1339_v14 = vmax.f32 %v1337_v36, %v1338_v3  ;;  %v1628_v16 = vadd.f32 %v931_v34, %v2327_v51  ;;  %v933_v18 = vpop.f32.mrb[10].mxu0  ;;  %v1389_v50 = vrot.slane %v1388_v44, 2  ;;  %v1234_v55 = vpop.f32.mrb[23].mxu1 }
 0x176   :  { %v2365_v31 = vmax.f32 %v1334_v40, %v1335_v33  ;;  %v1346_v54 = vmax.f32 %v1344_v45, %v1345_v63  ;;  %v1313_v37 = vsel %vm1302_vm14, %v1232_v9, -3e+38  ;;  %v935_v41 = vpop.f32.mrb[11].mxu0  ;;  %v1383_v59 = vmax.f32 %v1381_v38, %v1382_v1 }
 0x177   :  { %v1340_v48 = vrot.slane %v1339_v14, 2  ;;  %v1393_v60 = vmax.f32 %v1228_v5, %v1313_v37  ;;  %v1314_v10 = vsel %vm1302_vm14, %v1234_v55, -3e+38  ;;  %v1390_v35 = vmax.f32 %v1388_v44, %v1389_v50 }
 0x178   :  { %v1347_v47 = vrot.slane %v1346_v54, 2  ;;  %v1400_v61 = vmax.f32 %v1230_v49, %v1314_v10  ;;  %v1629_v51 = vadd.f32 %v933_v18, %v2329_v22  ;;  %v1384_v17 = vrot.slane %v1383_v59, 1 }
 0x179   :  { %v1341_v56 = vmax.f32 %v1339_v14, %v1340_v48  ;;  %v1394_v6 = vrot.slane %v1393_v60, 4  ;;  %v1630_v7 = vadd.f32 %v935_v41, %v2331_v25  ;;  %v1391_v15 = vrot.slane %v1390_v35, 1 }
 0x17a   :  { %v1348_v20 = vmax.f32 %v1346_v54, %v1347_v47  ;;  %v1401_v21 = vrot.slane %v1400_v61, 4  ;;  %v1295_v39 = vsel %vm1280_vm13, %v1629_v51, -3e+38  ;;  %v1385_v26 = vmax.f32 %v1383_v59, %v1384_v17  ;;  %v1238_v19 = vpop.f32.mrb[24].mxu1 }
 0x17b   :  { %v1342_v12 = vrot.slane %v1341_v56, 1  ;;  %v1395_v62 = vmax.f32 %v1393_v60, %v1394_v6  ;;  %v1351_v23 = vmax.f32 %v1627_v53, %v1295_v39  ;;  %v939_v4 = vpop.f32.mrb[12].mxu0  ;;  %v1392_v27 = vmax.f32 %v1390_v35, %v1391_v15  ;;  %v1240_v28 = vpop.f32.mrb[25].mxu1 }
 0x17c   :  { %v1349_v22 = vrot.slane %v1348_v20, 1  ;;  %v1402_v30 = vmax.f32 %v1400_v61, %v1401_v21  ;;  %v1296_v25 = vsel %vm1280_vm13, %v1630_v7, -3e+38  ;;  %v941_v32 = vpop.f32.mrb[13].mxu0  ;;  %v1242_v43 = vpop.f32.mrb[26].mxu1  ;;  %v1631_v42 = vadd.f32 %v939_v4, %v2333_v0 }
 0x17d   :  { %v1343_v11 = vmax.f32 %v1341_v56, %v1342_v12  ;;  %v1396_v36 = vrot.slane %v1395_v62, 2  ;;  %v1352_v29 = vrot.slane %v1351_v23, 4  ;;  %v1358_v40 = vmax.f32 %v1628_v16, %v1296_v25  ;;  %v943_v45 = vpop.f32.mrb[14].mxu0  ;;  %v1244_v3 = vpop.f32.mrb[27].mxu1 }
 0x17e   :  { %v2377_v2 = vmax.f32 %v1348_v20, %v1349_v22  ;;  %v1403_v38 = vrot.slane %v1402_v30, 2  ;;  %v1317_v5 = vsel %vm1302_vm14, %v1242_v43, -3e+38  ;;  %v945_v33 = vpop.f32.mrb[15].mxu0  ;;  %v1318_v1 = vsel %vm1302_vm14, %v1244_v3, -3e+38 }
 0x17f   :  { %v1397_v44 = vmax.f32 %v1395_v62, %v1396_v36  ;;  %v1353_v49 = vmax.f32 %v1351_v23, %v1352_v29  ;;  %v1359_v63 = vrot.slane %v1358_v40, 4  ;;  %v1407_v53 = vmax.f32 %v1238_v19, %v1317_v5 }
 0x180   :  { %v1404_v34 = vmax.f32 %v1402_v30, %v1403_v38  ;;  %v1632_v14 = vadd.f32 %v941_v32, %v2335_v58  ;;  %v1633_v9 = vadd.f32 %v943_v45, %v2337_v13  ;;  %v1414_v0 = vmax.f32 %v1240_v28, %v1318_v1 }
 0x181   :  { %v1398_v16 = vrot.slane %v1397_v44, 1  ;;  %v1354_v18 = vrot.slane %v1353_v49, 2  ;;  %v1360_v50 = vmax.f32 %v1358_v40, %v1359_v63  ;;  %v1408_v54 = vrot.slane %v1407_v53, 4 }
 0x182   :  { %v1405_v37 = vrot.slane %v1404_v34, 1  ;;  %v1299_v55 = vsel %vm1280_vm13, %v1633_v9, -3e+38  ;;  %v1634_v41 = vadd.f32 %v945_v33, %v2339_v46  ;;  %v1248_v35 = vpop.f32.mrb[28].mxu1  ;;  %v1415_v47 = vrot.slane %v1414_v0, 4 }
 0x183   :  { %v1399_v59 = vmax.f32 %v1397_v44, %v1398_v16  ;;  %v1355_v48 = vmax.f32 %v1353_v49, %v1354_v18  ;;  %v1361_v60 = vrot.slane %v1360_v50, 2  ;;  %v1409_v10 = vmax.f32 %v1407_v53, %v1408_v54  ;;  %v1250_v61 = vpop.f32.mrb[29].mxu1  ;;  %v1481_v16 = vld [vmem:[%s2433_s3] sm:$0xf]  ;;  %s1850_s3 = smov [#allocation8]  }
 0x184   :  { %v1406_v58 = vmax.f32 %v1404_v34, %v1405_v37  ;;  %v1365_v13 = vmax.f32 %v1631_v42, %v1299_v55  ;;  %v1300_v51 = vsel %vm1280_vm13, %v1634_v41, -3e+38  ;;  %v1252_v15 = vpop.f32.mrb[30].mxu1  ;;  %v1416_v20 = vmax.f32 %v1414_v0, %v1415_v47  ;;  %s1515_s12 = sshll.u32 %s1850_s3, 4  ;;  %s1516_s12 = int_to_ptr.vmem [resolvable:$true] %s1515_s12 }
 0x185   :  { %v1460_v17 = vsel %vm1443_vm15, %v1399_v59, %v1385_v26  ;;  %v1356_v56 = vrot.slane %v1355_v48, 1  ;;  %v1362_v6 = vmax.f32 %v1360_v50, %v1361_v60  ;;  %v1410_v7 = vrot.slane %v1409_v10, 2  ;;  %v1254_v12 = vpop.f32.mrb[31].mxu1  ;;  %s1817_s1 = scalar_lea.vmem %s1516_s12, 256  ;;  %p1822_p3 = scmp.lt.s32.totalorder %s1516_s12, %s1516_s12 }
 0x186   :  { %v1463_v46 = vsel %vm1443_vm15, %v1406_v58, %v1392_v27  ;;  %v1366_v21 = vrot.slane %v1365_v13, 4  ;;  %v1372_v39 = vmax.f32 %v1632_v14, %v1300_v51  ;;  %v1321_v4 = vsel %vm1302_vm14, %v1252_v15, -3e+38  ;;  %p1818_p2 = scmp.ne.s32.totalorder %s1516_s12, %s1817_s1  ;;  %p1823_p4 = scmp.lt.s32.totalorder %s1817_s1, %s1817_s1 }
 0x187   :  { %v1357_v62 = vmax.f32 %v1355_v48, %v1356_v56  ;;  %v1363_v19 = vrot.slane %v1362_v6, 1  ;;  %v1411_v23 = vmax.f32 %v1409_v10, %v1410_v7  ;;  %v1417_v22 = vrot.slane %v1416_v20, 2 }
 0x188   :  { %v1367_v30 = vmax.f32 %v1365_v13, %v1366_v21  ;;  %v1373_v28 = vrot.slane %v1372_v39, 4  ;;  %v1421_v26 = vmax.f32 %v1248_v35, %v1321_v4  ;;  %v1322_v36 = vsel %vm1302_vm14, %v1254_v12, -3e+38  ;;  %p1824_p5 = por %p1823_p4, %p1822_p3 }
 0x189   :  { %v1364_v25 = vmax.f32 %v1362_v6, %v1363_v19  ;;  %v1412_v32 = vrot.slane %v1411_v23, 1  ;;  %v1444_v27 = vsel %vm1443_vm15, %v1343_v11, %v2362_v24  ;;  %v1418_v29 = vmax.f32 %v1416_v20, %v1417_v22 }
 0x18a   :  { %v1368_v40 = vrot.slane %v1367_v30, 2  ;;  %v1374_v43 = vmax.f32 %v1372_v39, %v1373_v28  ;;  %v1422_v45 = vrot.slane %v1421_v26, 4  ;;  %v1428_v5 = vmax.f32 %v1250_v61, %v1322_v36  ;;  %p1825_p6 = pnand %p1824_p5, %p1818_p2 }
 0x18b   :  { %v1413_v38 = vmax.f32 %v1411_v23, %v1412_v32  ;;  %v1446_v3 = vsel %vm1445_vm0, %v1357_v62, %v1444_v27  ;;  %v1449_v42 = vsel %vm1443_vm15, %v2377_v2, %v2365_v31  ;;  %v1419_v33 = vrot.slane %v1418_v29, 1 }
 0x18c   :  { %v1369_v44 = vmax.f32 %v1367_v30, %v1368_v40  ;;  %v1375_v49 = vrot.slane %v1374_v43, 2  ;;  %v1423_v57 = vmax.f32 %v1421_v26, %v1422_v45  ;;  %v1429_v63 = vrot.slane %v1428_v5, 4 }
 0x18d   :  { %v1450_v53 = vsel %vm1445_vm0, %v1364_v25, %v1449_v42  ;;  %v1461_v24 = vsel %vm1445_vm0, %v1413_v38, %v1460_v17  ;;  %v1489_v11 = vsub.s32 1, %v2341_v52  ;;  %v1420_v34 = vmax.f32 %v1418_v29, %v1419_v33 }
 0x18e   :  { %v1370_v1 = vrot.slane %v1369_v44, 1  ;;  %v1376_v14 = vmax.f32 %v1374_v43, %v1375_v49  ;;  %v1424_v9 = vrot.slane %v1423_v57, 2  ;;  %v1430_v31 = vmax.f32 %v1428_v5, %v1429_v63 }
 0x18f   :  { %v1464_v54 = vsel %vm1445_vm0, %v1420_v34, %v1463_v46  ;;  %v1486_v0 = vrot.slane %v1481_v16, %v1485_v8  ;;  %v1490_v55 = vrot.slane %v1481_v16, %v1489_v11  ;;  %v1493_v41 = vsub.s32 2, %v2341_v52 }
 0x190   :  { %v1371_v2 = vmax.f32 %v1369_v44, %v1370_v1  ;;  %v1377_v18 = vrot.slane %v1376_v14, 1  ;;  %v1425_v50 = vmax.f32 %v1423_v57, %v1424_v9  ;;  %v1431_v37 = vrot.slane %v1430_v31, 2 }
 0x191   :  { %v1497_v10 = vsub.s32 3, %v2341_v52  ;;  %v1499_v51 = vcombine.low %v1486_v0, %v1490_v55  ;;  %v1494_v56 = vrot.slane %v1481_v16, %v1493_v41 }
 0x192   :  { %v1378_v59 = vmax.f32 %v1376_v14, %v1377_v18  ;;  %v1426_v48 = vrot.slane %v1425_v50, 1  ;;  %v1448_v60 = vsel %vm1447_vm1, %v1371_v2, %v1446_v3  ;;  %v1432_v35 = vmax.f32 %v1430_v31, %v1431_v37 }
 0x193   :  { %v1498_v8 = vrot.slane %v1481_v16, %v1497_v10 }
 0x194   :  { %v1427_v58 = vmax.f32 %v1425_v50, %v1426_v48  ;;  %v1451_v47 = vsel %vm1447_vm1, %v1378_v59, %v1450_v53  ;;  %v1433_v13 = vrot.slane %v1432_v35, 1 }
 0x195   :  { %v1468_v61 = vcombine.low %v1448_v60, %v1451_v47  ;;  %v1500_v21 = vcombine.low %v1494_v56, %v1498_v8 }
 0x196   :  { %v1462_v17 = vsel %vm1447_vm1, %v1427_v58, %v1461_v24  ;;  %v1434_v6 = vmax.f32 %v1432_v35, %v1433_v13 }
 0x197   :  { %v1472_v7 = vmax.f32 %v1468_v61, -3e+38 }
 0x198   :  { %v1465_v15 = vsel %vm1447_vm1, %v1434_v6, %v1464_v54 }
 0x199   :  { %v1503_v46 = vadd.f32 %v1499_v51, %v1472_v7  ;;  %v1469_v20 = vcombine.low %v1462_v17, %v1465_v15 }
 0x19b   :  { %v1505_v39 = vmax.f32 %v1503_v46, 0.0  ;;  %v1473_v52 = vmax.f32 %v1469_v20, -3e+38 }
 0x19d   :  { %1507 = vst [vmem:[#allocation8] sm:$0xff] %v1505_v39  ;;  %v1504_v12 = vadd.f32 %v1500_v21, %v1473_v52 }
 0x19f   :  { %v1506_v62 = vmax.f32 %v1504_v12, 0.0 }
 0x1a1   :  { %1508 = vst [vmem:[#allocation8 + $0x8] sm:$0xff] %v1506_v62 }
 0x1a2   :  { %1828 = shalt.err (!%p1825_p6)
}
 0x1a3   :  { %s1829_s14 = scalar_lea.hbm %s2434_s4, 256 }
 0x1a4   :  { %p1830_p7 = scmp.ne.s32.totalorder %s2434_s4, %s1829_s14  ;;  %p1833_p8 = scmp.lt.u32.totalorder %s1829_s14, %s2434_s4 }
 0x1a6   :  { %p1835_p9 = pnand %p1833_p8, %p1830_p7 }
 0x1a8   :  { %1838 = shalt.err (!%p1835_p9)
}
 0x1a9   :  { %1518 = dma.vmem_to_hbm [thread:$0]  %s1516_s12, 256, %s2434_s4, [#allocation5]  }
 0x1aa   :  { %1843 = dma.done.wait [#allocation5], 256  }
 0x1ab   :  { %1844 = vsyncadd [#allocation5], 4294967040 }
 0x1ac   :  { %1522 = vsyncpa [#allocation4], 1 }
 0x1ad   :  { %1523 = vsyncpa [#allocation7], 1 }
 0x1ae   :  { %1524 = vsyncpa [#allocation5], 1 }

</bundles_post_ra>
